<compile_context>
chip_gen: v7x
topology: tpu7x:2x2x1
jax: 0.10.0
libtpu: 0.0.40
codegen_flags: <defaults>
</compile_context>

<pallas_src>
import functools
import math

import jax
import jax.numpy as jnp
from jax.experimental import pallas as pl
from jax.experimental.pallas import tpu as pltpu


def _round_up(v, m):
    return (v + m - 1) // m * m


def _vmem_capacity_bytes():
    """Per-core VMEM capacity; conservative 64 MiB (v7x) fallback."""
    try:
        info = pltpu.get_tpu_info()
        cap = getattr(info, "vmem_capacity_bytes", None)
        if cap:
            return int(cap)
    except Exception:
        pass
    return 64 * 1024 * 1024


def _pad_cast(a, pad_widths, dtype):
    """Cast (narrowing first) and zero-pad, skipping whichever is a no-op."""
    dtype = jnp.dtype(dtype)
    if dtype != a.dtype and dtype.itemsize < a.dtype.itemsize:
        a = a.astype(dtype)          # narrow before padding -> fewer bytes written
    if any(hi for _, hi in pad_widths):
        a = jnp.pad(a, pad_widths)
    if a.dtype != dtype:
        a = a.astype(dtype)
    return a


def _choose_tiles(B, Np, Finp, Foutp, in_isz, out_isz, budget):
    """Pick (batch_tile BT, row_tile TM, k_tile TK); Np/Finp/Foutp are padded."""
    tile = Np if Np <= 512 else next(t for t in (512, 256, 128) if Np % t == 0)
    TM = TK = tile

    def step_bytes(bt, tm, tk):
        x_b = bt * tk * Finp * in_isz                      # x k-tile
        a_b = bt * tm * tk * in_isz                        # adj tile
        o_b = bt * tm * Foutp * out_isz                    # out tile
        w_b = Finp * Foutp * in_isz + Foutp * 4            # resident weight + bias
        sup = bt * Np * Foutp * in_isz                     # support scratch (single)
        acc = bt * tm * Foutp * 4                          # f32 accumulator scratch
        tmp = bt * tk * Foutp * 4 + bt * tm * Foutp * 4    # in-kernel f32 temporaries
        return 2 * (x_b + a_b + o_b + w_b) + sup + acc + tmp

    # >= 2 batch-grid steps whenever B >= 2 so both v7x TensorCores get work.
    BT = max(1, -(-B // 2))
    while BT > 1 and step_bytes(BT, TM, TK) > budget:
        BT = max(1, BT // 2)
    if step_bytes(BT, TM, TK) > budget:
        TM = TK = 128        # Np is always a multiple of 128 after padding
    return BT, TM, TK


def _gcn_kernel(x_ref, adj_ref, w_ref, *rest, has_bias):
    """One grid step at (batch-tile b, row-tile m, k-tile k).

    x_ref:       (BT, TK, Finp)   node-feature k-tile (consumed only at m == 0)
    adj_ref:     (BT, TM, TK)     adjacency row/col tile
    w_ref:       (Finp, Foutp)    resident weight
    b_ref:       (1, 1, Foutp)    resident bias (optional)
    o_ref:       (BT, TM, Foutp)  output tile (written at k == nk - 1)
    support_ref: (BT, Np, Foutp)  VMEM scratch: x @ W for this batch tile
    acc_ref:     (BT, TM, Foutp)  f32 accumulator for adj @ support
    """
    if has_bias:
        bias_ref, o_ref, support_ref, acc_ref = rest
    else:
        o_ref, support_ref, acc_ref = rest
        bias_ref = None

    m = pl.program_id(1)
    k = pl.program_id(2)
    nk = pl.num_programs(2)

    BT, TK, Finp = x_ref.shape
    Foutp = w_ref.shape[1]
    k_off = pl.multiple_of(k * TK, TK)

    # Pass 1 (hoisted): support[:, k-tile, :] = x[:, k-tile, :] @ W, computed
    # once per batch tile (only at m == 0) as a single large-M matmul.
    @pl.when(m == 0)
    def _():
        x2d = x_ref[...].reshape(BT * TK, Finp)
        s = jnp.dot(x2d, w_ref[...], preferred_element_type=jnp.float32)
        support_ref[:, pl.ds(k_off, TK), :] = (
            s.reshape(BT, TK, Foutp).astype(support_ref.dtype))

    # Pass 2: accumulate adj[:, m-tile, k-tile] @ support[:, k-tile, :] over k.
    @pl.when(k == 0)
    def _():
        acc_ref[...] = jnp.zeros_like(acc_ref)

    sup_k = support_ref[:, pl.ds(k_off, TK), :]            # (BT, TK, Foutp)
    acc_ref[...] += jnp.einsum(
        "bmk,bkf->bmf", adj_ref[...], sup_k,
        preferred_element_type=jnp.float32)

    @pl.when(k == nk - 1)
    def _():
        out = acc_ref[...]
        if has_bias:
            out = out + bias_ref[...].astype(jnp.float32)
        o_ref[...] = out.astype(o_ref.dtype)


def graph_convolution(x, adj, weight, bias=None, *, compute_dtype=None):
    """Pallas GCN layer forward.

    x:      (B, N, Fin) or (N, Fin)
    adj:    (B, N, N)   or (N, N)
    weight: (Fin, Fout)
    bias:   (1, 1, Fout) / (Fout,) or None
    compute_dtype: dtype fed to the MXU (default: x.dtype).  bfloat16 is
        recommended on v5e, v6e and v7x (all have native bf16 MXUs, and it
        halves adjacency DMA bytes); accumulation is always f32.
    """
    squeeze_batch = False
    if x.ndim == 2:
        x, adj = x[None], adj[None]
        squeeze_batch = True

    B, N, Fin = x.shape
    assert adj.shape == (B, N, N), (adj.shape, (B, N, N))
    assert weight.shape[0] == Fin
    Fout = weight.shape[1]
    out_dtype = x.dtype
    compute_dtype = jnp.dtype(compute_dtype if compute_dtype is not None else x.dtype)
    out_itemsize = jnp.dtype(out_dtype).itemsize

    # Pad every matmul dimension to a multiple of 128: full MXU tiles and a
    # lane-dense output store.  Zero padding does not change the math.
    Np = _round_up(N, 128)
    Finp = _round_up(Fin, 128)
    Foutp = _round_up(Fout, 128)

    cap = _vmem_capacity_bytes()
    budget = int(cap * 0.4)          # tile-selection budget (~24 MiB v7x, ~51 MiB v6e)
    vmem_limit = int(cap * 0.8)      # leave headroom for Mosaic internal scratch

    BT, TM, TK = _choose_tiles(B, Np, Finp, Foutp,
                               compute_dtype.itemsize, out_itemsize, budget)
    Bp = _round_up(B, BT)

    x_p = _pad_cast(x, ((0, Bp - B), (0, Np - N), (0, Finp - Fin)), compute_dtype)
    adj_p = _pad_cast(adj, ((0, Bp - B), (0, Np - N), (0, Np - N)), compute_dtype)
    w_p = _pad_cast(weight, ((0, Finp - Fin), (0, Foutp - Fout)), compute_dtype)

    grid = (Bp // BT, Np // TM, Np // TK)

    x_spec = pl.BlockSpec(
        (BT, TK, Finp),
        # x is consumed only while filling the support scratch at m == 0; pin
        # the block index for m > 0 so it is not re-streamed per row tile.
        lambda b, m, k: (b, jnp.where(m == 0, k, 0), 0))
    adj_spec = pl.BlockSpec((BT, TM, TK), lambda b, m, k: (b, m, k))
    # NOTE: weight/bias blocks never change; pipeline_mode=pl.Buffered(1) would
    # reclaim their second buffer but is skipped here for lowering portability.
    w_spec = pl.BlockSpec((Finp, Foutp), lambda b, m, k: (0, 0))
    o_spec = pl.BlockSpec((BT, TM, Foutp), lambda b, m, k: (b, m, 0))

    in_specs = [x_spec, adj_spec, w_spec]
    args = [x_p, adj_p, w_p]
    has_bias = bias is not None
    if has_bias:
        b3 = jnp.reshape(bias, (1, 1, Fout)).astype(jnp.float32)
        b_p = _pad_cast(b3, ((0, 0), (0, 0), (0, Foutp - Fout)), jnp.float32)
        in_specs.append(pl.BlockSpec((1, 1, Foutp), lambda b, m, k: (0, 0, 0)))
        args.append(b_p)

    flops = 2 * Bp * Np * Finp * Foutp + 2 * Bp * Np * Np * Foutp
    bytes_accessed = (
        x_p.size * x_p.dtype.itemsize
        + adj_p.size * adj_p.dtype.itemsize
        + w_p.size * w_p.dtype.itemsize
        + Bp * Np * Foutp * out_itemsize)
    if has_bias:
        bytes_accessed += int(args[-1].size * 4)

    # TODO(synk): for extreme N*Fout the (BT, Np, Foutp) support scratch itself
    # can exceed VMEM; stream support tiles through HBM in that regime.
    out_p = pl.pallas_call(
        functools.partial(_gcn_kernel, has_bias=has_bias),
        out_shape=jax.ShapeDtypeStruct((Bp, Np, Foutp), out_dtype),
        grid_spec=pltpu.PrefetchScalarGridSpec(
            num_scalar_prefetch=0,
            grid=grid,
            in_specs=in_specs,
            out_specs=o_spec,
            scratch_shapes=[
                pltpu.VMEM((BT, Np, Foutp), compute_dtype),   # hoisted support
                pltpu.VMEM((BT, TM, Foutp), jnp.float32),     # f32 accumulator
            ],
        ),
        compiler_params=pltpu.CompilerParams(
            # Only the batch axis is parallel: the m/k iterations depend on the
            # support scratch filled at m == 0 and on the running accumulator,
            # so they must stay on one core and in order.  Batch is kept at
            # >= 2 grid steps when B >= 2 so both v7x TensorCores get work.
            dimension_semantics=("parallel", "arbitrary", "arbitrary"),
            vmem_limit_bytes=vmem_limit,
        ),
        cost_estimate=pl.CostEstimate(
            flops=int(flops), transcendentals=0,
            bytes_accessed=int(bytes_accessed)),
    )(*args)

    out = out_p[:B, :N, :Fout]
    if squeeze_batch:
        out = out[0]
    return out


if __name__ == "__main__":
    # Small shapes consistent with the module.
    B, N = 2, 16          # batch, number of graph nodes
    Fin, Fout = 32, 64    # in_features, out_features

    key = jax.random.PRNGKey(0)
    kx, kadj, kw, kb = jax.random.split(key, 4)

    x = jax.random.normal(kx, (B, N, Fin), dtype=jnp.float32)
    adj = jax.random.uniform(kadj, (B, N, N), dtype=jnp.float32)

    # reset_parameters(): uniform(-stdv, stdv) with stdv = 1/sqrt(out_features)
    stdv = 1.0 / math.sqrt(Fout)
    weight = jax.random.uniform(
        kw, (Fin, Fout), dtype=jnp.float32, minval=-stdv, maxval=stdv)
    bias = jax.random.uniform(
        kb, (1, 1, Fout), dtype=jnp.float32, minval=-stdv, maxval=stdv)

    ref = jnp.einsum("bnm,bmf->bnf", adj, jnp.einsum("bni,io->bno", x, weight))

    # bias=False (module default), f32 compute
    out_nb = jax.block_until_ready(graph_convolution(x, adj, weight))
    assert out_nb.shape == (B, N, Fout)
    assert jnp.allclose(out_nb, ref, atol=1e-4, rtol=1e-4), "f32 no-bias mismatch"

    # bias=True, f32 compute
    out_b = jax.block_until_ready(graph_convolution(x, adj, weight, bias=bias))
    assert jnp.allclose(out_b, ref + bias, atol=1e-4, rtol=1e-4), "f32 bias mismatch"

    # bf16-input / f32-accumulate fast path (all generations); looser tolerance.
    out_bf = jax.block_until_ready(
        graph_convolution(x, adj, weight, bias=bias, compute_dtype=jnp.bfloat16))
    assert jnp.allclose(out_bf, ref + bias, atol=5e-2, rtol=5e-2), "bf16 mismatch"

    print("KERNEL_OK")
</pallas_src>

<mosaic_0001>
module attributes {stable_mosaic.version = 11 : i64} {
  func.func @_gcn_kernel(%arg0: i32, %arg1: i32, %arg2: i32, %arg3: memref<1x128x128xf32, #tpu.memory_space<vmem>>, %arg4: memref<1x128x128xf32, #tpu.memory_space<vmem>>, %arg5: memref<128x128xf32, #tpu.memory_space<vmem>>, %arg6: memref<1x128x128xf32, #tpu.memory_space<vmem>>, %arg7: memref<1x128x128xf32, #tpu.memory_space<vmem>>, %arg8: memref<1x128x128xf32, #tpu.memory_space<vmem>>) attributes {dimension_semantics = [#tpu.dimension_semantics<parallel>, #tpu.dimension_semantics<arbitrary>, #tpu.dimension_semantics<arbitrary>], iteration_bounds = array<i64: 2, 1, 1>, scalar_prefetch = 0 : i64, scratch_operands = 2 : i64, tpu.core_type = #tpu.core_type<tc>, window_params = [{transform_indices = @transform_0, window_bounds = array<i64: 1, 128, 128>}, {transform_indices = @transform_1, window_bounds = array<i64: 1, 128, 128>}, {pipeline_mode = #tpu.pipeline_mode<synchronous>, transform_indices = @transform_2, window_bounds = array<i64: 128, 128>}, {transform_indices = @transform_3, window_bounds = array<i64: 1, 128, 128>}]} {
    %c128_i32 = arith.constant 128 : i32
    %0 = arith.muli %arg2, %c128_i32 : i32
    %1 = tpu.assume_multiple %0, 128 : i32
    %c0_i32 = arith.constant 0 : i32
    %2 = arith.cmpi eq, %arg1, %c0_i32 : i32
    %3 = arith.extui %2 : i1 to i32
    %c0_i32_0 = arith.constant 0 : i32
    %4 = arith.cmpi ne, %3, %c0_i32_0 : i32
    scf.if %4 {
      %c0_15 = arith.constant 0 : index
      %c0_16 = arith.constant 0 : index
      %c0_17 = arith.constant 0 : index
      %18 = vector.load %arg3[%c0_15, %c0_16, %c0_17] : memref<1x128x128xf32, #tpu.memory_space<vmem>>, vector<1x128x128xf32>
      %19 = vector.shape_cast %18 : vector<1x128x128xf32> to vector<128x128xf32>
      %c0_18 = arith.constant 0 : index
      %c0_19 = arith.constant 0 : index
      %20 = vector.load %arg5[%c0_18, %c0_19] : memref<128x128xf32, #tpu.memory_space<vmem>>, vector<128x128xf32>
      %cst_20 = arith.constant dense<0.000000e+00> : vector<128x128xf32>
      %21 = tpu.matmul %19, %20, %cst_20 {dimension_numbers = #tpu.dot_dimension_numbers<[1], [0], [0], [1], [0, 0, 1, 1], [], []>} : vector<128x128xf32>, vector<128x128xf32>, vector<128x128xf32> -> vector<128x128xf32>
      %22 = vector.shape_cast %21 : vector<128x128xf32> to vector<1x128x128xf32>
      %c0_21 = arith.constant 0 : index
      %23 = arith.index_cast %1 : i32 to index
      %c0_22 = arith.constant 0 : index
      %24 = vector.load %arg7[%c0_21, %23, %c0_22] : memref<1x128x128xf32, #tpu.memory_space<vmem>>, vector<1x128x128xf32>
      tpu.vector_store %arg7[%c0_21, %23, %c0_22], %22 {strides = array<i32>} : memref<1x128x128xf32, #tpu.memory_space<vmem>>, vector<1x128x128xf32>,
    } else {
    }
    %c0_i32_1 = arith.constant 0 : i32
    %5 = arith.cmpi eq, %arg2, %c0_i32_1 : i32
    %6 = arith.extui %5 : i1 to i32
    %c0_i32_2 = arith.constant 0 : i32
    %7 = arith.cmpi ne, %6, %c0_i32_2 : i32
    scf.if %7 {
      %cst_15 = arith.constant 0.000000e+00 : f32
      %18 = vector.broadcast %cst_15 : f32 to vector<1x128x128xf32>
      %c0_16 = arith.constant 0 : index
      %c0_17 = arith.constant 0 : index
      %c0_18 = arith.constant 0 : index
      %19 = vector.load %arg8[%c0_16, %c0_17, %c0_18] : memref<1x128x128xf32, #tpu.memory_space<vmem>>, vector<1x128x128xf32>
      tpu.vector_store %arg8[%c0_16, %c0_17, %c0_18], %18 {strides = array<i32>} : memref<1x128x128xf32, #tpu.memory_space<vmem>>, vector<1x128x128xf32>,
    } else {
    }
    %c0 = arith.constant 0 : index
    %8 = arith.index_cast %1 : i32 to index
    %c0_3 = arith.constant 0 : index
    %9 = vector.load %arg7[%c0, %8, %c0_3] : memref<1x128x128xf32, #tpu.memory_space<vmem>>, vector<1x128x128xf32>
    %c0_4 = arith.constant 0 : index
    %c0_5 = arith.constant 0 : index
    %c0_6 = arith.constant 0 : index
    %10 = vector.load %arg8[%c0_4, %c0_5, %c0_6] : memref<1x128x128xf32, #tpu.memory_space<vmem>>, vector<1x128x128xf32>
    %c0_7 = arith.constant 0 : index
    %c0_8 = arith.constant 0 : index
    %c0_9 = arith.constant 0 : index
    %11 = vector.load %arg4[%c0_7, %c0_8, %c0_9] : memref<1x128x128xf32, #tpu.memory_space<vmem>>, vector<1x128x128xf32>
    "tpu.trace_start"() <{level = 10 : i32, message = "bmk,bkf->bmf"}> : () -> ()
    %cst = arith.constant dense<0.000000e+00> : vector<1x128x128xf32>
    %12 = tpu.matmul %11, %9, %cst {dimension_numbers = #tpu.dot_dimension_numbers<[2], [1], [1], [2], [0, 0, 0, 1, 1, 2], [0], [0]>} : vector<1x128x128xf32>, vector<1x128x128xf32>, vector<1x128x128xf32> -> vector<1x128x128xf32>
    "tpu.trace_stop"() : () -> ()
    %13 = arith.addf %10, %12 : vector<1x128x128xf32>
    %c0_10 = arith.constant 0 : index
    %c0_11 = arith.constant 0 : index
    %c0_12 = arith.constant 0 : index
    %14 = vector.load %arg8[%c0_10, %c0_11, %c0_12] : memref<1x128x128xf32, #tpu.memory_space<vmem>>, vector<1x128x128xf32>
    tpu.vector_store %arg8[%c0_10, %c0_11, %c0_12], %13 {strides = array<i32>} : memref<1x128x128xf32, #tpu.memory_space<vmem>>, vector<1x128x128xf32>,
    %c0_i32_13 = arith.constant 0 : i32
    %15 = arith.cmpi eq, %arg2, %c0_i32_13 : i32
    %16 = arith.extui %15 : i1 to i32
    %c0_i32_14 = arith.constant 0 : i32
    %17 = arith.cmpi ne, %16, %c0_i32_14 : i32
    scf.if %17 {
      %c0_15 = arith.constant 0 : index
      %c0_16 = arith.constant 0 : index
      %c0_17 = arith.constant 0 : index
      %18 = vector.load %arg8[%c0_15, %c0_16, %c0_17] : memref<1x128x128xf32, #tpu.memory_space<vmem>>, vector<1x128x128xf32>
      %c0_18 = arith.constant 0 : index
      %c0_19 = arith.constant 0 : index
      %c0_20 = arith.constant 0 : index
      %19 = vector.load %arg6[%c0_18, %c0_19, %c0_20] : memref<1x128x128xf32, #tpu.memory_space<vmem>>, vector<1x128x128xf32>
      tpu.vector_store %arg6[%c0_18, %c0_19, %c0_20], %18 {strides = array<i32>} : memref<1x128x128xf32, #tpu.memory_space<vmem>>, vector<1x128x128xf32>,
    } else {
    }
    return
  }
  func.func @transform_0(%arg0: i32, %arg1: i32, %arg2: i32) -> (i32, i32, i32) {
    %c0_i32 = arith.constant 0 : i32
    %0 = arith.cmpi eq, %arg1, %c0_i32 : i32
    %c0_i32_0 = arith.constant 0 : i32
    %1 = arith.select %0, %arg2, %c0_i32_0 : i32
    %c0_i32_1 = arith.constant 0 : i32
    %c0_i32_2 = arith.constant 0 : i32
    return %arg0, %1, %c0_i32_1 : i32, i32, i32
  }
  func.func @transform_1(%arg0: i32, %arg1: i32, %arg2: i32) -> (i32, i32, i32) {
    %c0_i32 = arith.constant 0 : i32
    return %arg0, %arg1, %arg2 : i32, i32, i32
  }
  func.func @transform_2(%arg0: i32, %arg1: i32, %arg2: i32) -> (i32, i32) {
    %c0_i32 = arith.constant 0 : i32
    %c0_i32_0 = arith.constant 0 : i32
    %c0_i32_1 = arith.constant 0 : i32
    return %c0_i32, %c0_i32_0 : i32, i32
  }
  func.func @transform_3(%arg0: i32, %arg1: i32, %arg2: i32) -> (i32, i32, i32) {
    %c0_i32 = arith.constant 0 : i32
    %c0_i32_0 = arith.constant 0 : i32
    return %arg0, %arg1, %c0_i32 : i32, i32, i32
  }
}

</mosaic_0001>

<bundles_post_ra>
// kernel: tpu_custom_call.1
= control target key start
LH: loop header
LB: loop body
LE: loop exit
PB: predicated region body
PF: predicated region fallthrough
CT: control target
= control target key end

     0   :  { %s1792_s0 = inlined_call_operand.hbm [shape: f32[2,128,128], index: 0, kind: input, shape index: {}]   ;;  %s1793_s1 = inlined_call_operand.hbm [shape: f32[2,128,128], index: 1, kind: input, shape index: {}]   ;;  %s1794_s2 = inlined_call_operand.hbm [shape: f32[128,128], index: 2, kind: input, shape index: {}]   ;;  %s1795_s3 = inlined_call_operand.hbm [shape: f32[2,128,128], index: 3, kind: output, shape index: {}]  }
   0x1   :  { %1803 = sst [smem:[#allocation15_spill]] %s1792_s0 }
   0x2   :  { %1804 = sst [smem:[#allocation16_spill]] %s1794_s2 }
   0x3   :  { %8 = vsyncpa [#allocation5], 0 }
   0x4   :  { %10 = vsyncpa [#allocation5 + $0x1], 0 }
   0x5   :  { %11 = vsyncpa [#allocation8], 0 }
   0x6   :  { %13 = vsyncpa [#allocation8 + $0x1], 0 }
   0x7   :  { %14 = vsyncpa [#allocation6], 0 }
   0x8   :  { %16 = vsyncpa [#allocation6 + $0x1], 0  ;;  %s1466_s12 = smov 0   ;;  %s1468_s13 = smov 0  }
   0x9   :  { %s1470_s14 = smov 0   ;;  %s1472_s15 = smov 0  }
   0xa   :  { %s1474_s16 = smov 0   ;;  %s1476_s17 = smov 0  }
   0xb LB: > { %s1497_s18 = sadd.s32 4294967295, %s1436_s17   ;;  %s913_s19 = sadd.s32 4294967294, %s1436_s17   ;;  %s1436_s17 = sphi %s1476_s17, %s22_s17   ;;  %s1432_s16 = sphi %s1474_s16, %s1827_s16   ;;  %s1428_s15 = sphi %s1472_s15, %s1826_s15   ;;  %s1424_s14 = sphi %s1470_s14, %s1825_s14   ;;  %s1420_s13 = sphi %s1468_s13, %s1824_s13   ;;  %s1416_s12 = sphi %s1466_s12, %s1823_s12  }
   0xc   : > { %p67_p0 = scmp.ne.s32.totalorder %s1420_s13, %s1416_s12  ;;  %p1796_p1 = scmp.eq.s32.totalorder %s1497_s18, 0 }
   0xd   : > { %p150_p3 = scmp.eq.s32.totalorder %s913_s19, 1  ;;  %p914_p5 = scmp.ge.s32.totalorder %s1436_s17, 1 }
   0xe   : > { %p1506_p4 = por %p1796_p1, %p67_p0  ;;  %p157_p7 = scmp.lt.s32.totalorder %s1436_s17, 3 }
   0xf   : > { %p1511_p6 = por %p150_p3, %p67_p0  ;;  %s1438_s23 = smov [#allocation9]  }
  0x10   : > { %s1805_s20 = scalar_select %p1506_p4, 1, 0 }
  0x11   : > { %s1806_s21 = scalar_select %p1511_p6, 1, 0 }
  0x12   : > { %p1516_p8 = pnand %p914_p5, %p157_p7  ;;  %s169_s24 = sshll.u32 %s1438_s23, 4  ;;  %s170_s24 = int_to_ptr.vmem [resolvable:$true] %s169_s24 }
  0x13   : > { %s41_s26 = sadd.s32 1, %s1432_s16  ;;  %s1809_s2 = sld [smem:[#allocation16_spill]] }
  0x14   : > { %s1807_s22 = scalar_select %p1516_p8, 1, 0 }
  0x15   : > { %p1186_p9 = pneg %p1516_p8 }
  0x17   : > { %p1525_p11 = pnand %p1186_p9, %p1796_p1 }
  0x19   : > { %s1258_s29 = scalar_lea.hbm %s1809_s2, 2048  ;;  %p1260_p13 = pneg %p1525_p11 }
  0x1a   : > { %p1259_p12 = scmp.ne.s32.totalorder %s1809_s2, %s1258_s29  ;;  %p1265_p5 = scmp.lt.u32.totalorder %s1258_s29, %s1809_s2 }
  0x1c   : > { %p1261_p0 = pnand %p1260_p13, %p1259_p12 }
  0x1e   : > { %p1262_p3 = pneg %p1261_p0 }
  0x20   : > { %p1267_p7 = pnand %p1265_p5, %p1262_p3 }
  0x22   : > { %1270 = shalt.err (!%p1267_p7)
}
  0x23   : > { %s1271_s7 = scalar_lea.vmem %s170_s24, 2048  ;;  %p1279_p2 = scmp.lt.s32.totalorder %s170_s24, %s170_s24 }
  0x24   : > { %p1272_p9 = scmp.ne.s32.totalorder %s170_s24, %s1271_s7  ;;  %p1280_p6 = scmp.lt.s32.totalorder %s1271_s7, %s1271_s7 }
  0x26   : > { %p1274_p10 = pnand %p1272_p9, %p1260_p13  ;;  %p1281_p4 = por %p1280_p6, %p1279_p2 }
  0x28   : > { %p1275_p1 = pneg %p1274_p10 }
  0x2a   : > { %p1282_p8 = pnand %p1281_p4, %p1275_p1 }
  0x2c   : > { %1285 = shalt.err (!%p1282_p8)
}
  0x2d   : > { %s1799_s8 = smov 128   ;;  %s1801_s9 = smov 8  }
  0x2e   : > { %1189 = dma.hbm_to_vmem [thread:$0]  (!%p1525_p11), %s1809_s2, 2048, %s170_s24, [#allocation8], %s1799_s8, %s1799_s8, %s1801_s9  }
  0x2f   : > { %p43_p1 = scmp.ge.s32.totalorder %s41_s26, 2  ;;  %s54_s19 = sadd.s32 1, %s1424_s14 }
  0x30   : > { %p61_p2 = scmp.ne.s32.totalorder %s1424_s14, %s1420_s13  ;;  %p62_p4 = scmp.eq.s32.totalorder %s1436_s17, 0 }
  0x31   : > { %s1829_s26 = smov (%p43_p1, %s41_s26), 0  ;;  %p1811_p8 = scmp.eq.s32.totalorder %s1497_s18, 1 }
  0x32   : > { %p1555_p6 = por %p62_p4, %p61_p2  ;;  %s49_s27 = ssub.s32 %s1432_s16, %s1829_s26 }
  0x33   : > { %p1561_p10 = por %p1811_p8, %p61_p2  ;;  %p1202_p12 = scmp.lt.s32.totalorder %s1436_s17, 2 }
  0x34   : > { %p52_p11 = scmp.eq.s32.totalorder %s49_s27, 0  ;;  %s183_s24 = sand.u32 1, %s1424_s14  }
  0x35   : > { %s917_s28 = sshll.u32 %s183_s24, 7  ;;  %s933_s30 = sshll.u32 %s1432_s16, 11 }
  0x36   : > { %s1570_s29 = scalar_select %p52_p11, %s1424_s14, %s54_s19  }
  0x37   : > { %s1813_s0 = sld [smem:[#allocation15_spill]]  ;;  %s187_s7 = scalar_lea.vmem [#allocation4], %s917_s28 }
  0x38   : > { %s198_s10 = sshll.u32 %s187_s7, 4  ;;  %p1582_p13 = pnand %p1202_p12, %p1555_p6  ;;  %s1578_s10 = int_to_ptr.vmem [resolvable:$true] %s198_s10 }
  0x39   : > { %s1589_s4 = scalar_lea.hbm %s1793_s1, %s933_s30  ;;  %s212_s5 = scalar_lea.vmem [#allocation7], %s917_s28 }
  0x3a   : > { %s1591_s8 = sshll.u32 %s212_s5, 4  ;;  %s1593_s9 = scalar_lea.sflag [#allocation5], %s183_s24  ;;  %s1625_s8 = int_to_ptr.vmem [resolvable:$true] %s1591_s8 }
  0x3b   : > { %p1288_p3 = pneg %p1582_p13 }
  0x3d   : > { %s1576_s6 = scalar_lea.hbm %s1813_s0, %s933_s30  ;;  %s1291_s19 = scalar_lea.hbm %s1813_s0, 4096 }
  0x3e   : > { %s1286_s7 = scalar_lea.hbm %s1576_s6, 2048  ;;  %p1292_p9 = scmp.lt.u32.totalorder %s1576_s6, %s1813_s0 }
  0x3f   : > { %p1287_p0 = scmp.ne.s32.totalorder %s1576_s6, %s1286_s7  ;;  %p1293_p1 = scmp.lt.u32.totalorder %s1291_s19, %s1286_s7 }
  0x40   : > { %p1295_p4 = scmp.lt.u32.totalorder %s1286_s7, %s1576_s6 }
  0x41   : > { %p1289_p5 = pnand %p1288_p3, %p1287_p0  ;;  %p1294_p2 = por %p1293_p1, %p1292_p9 }
  0x43   : > { %p1290_p7 = pneg %p1289_p5  ;;  %p1296_p6 = por %p1295_p4, %p1294_p2 }
  0x45   : > { %p1297_p8 = pnand %p1296_p6, %p1290_p7 }
  0x47   : > { %1300 = shalt.err (!%p1297_p8)
}
  0x48   : > { %s1301_s24 = scalar_lea.vmem %s1578_s10, 2048  ;;  %s1441_s2 = smov [#allocation4]  }
  0x49   : > { %p1302_p12 = scmp.ne.s32.totalorder %s1578_s10, %s1301_s24  ;;  %s1306_s28 = sshll.u32 %s1441_s2, 4  ;;  %s1307_s28 = int_to_ptr.vmem [resolvable:$false] %s1306_s28 }
  0x4a   : > { %s1308_s5 = scalar_lea.vmem %s1307_s28, 4096  ;;  %p1309_p5 = scmp.lt.s32.totalorder %s1578_s10, %s1307_s28 }
  0x4b   : > { %p1304_p11 = pnand %p1302_p12, %p1288_p3  ;;  %p1310_p9 = scmp.lt.s32.totalorder %s1308_s5, %s1301_s24 }
  0x4d   : > { %p1305_p0 = pneg %p1304_p11  ;;  %p1311_p1 = por %p1310_p9, %p1309_p5 }
  0x4f   : > { %p1312_p2 = pnand %p1311_p1, %p1305_p0 }
  0x51   : > { %1315 = shalt.err (!%p1312_p2)
}
  0x52   : > { %s1815_s7 = smov 8   ;;  %s1816_s23 = smov 128  }
  0x53   : > { %1193 = dma.hbm_to_vmem [thread:$0]  (!%p1582_p13), %s1576_s6, 2048, %s1578_s10, %s1593_s9, %s1816_s23, %s1816_s23, %s1815_s7  }
  0x54   : > { %s208_s19 = sand.u32 1, %s1436_s17   ;;  %s1316_s30 = scalar_lea.hbm %s1589_s4, 2048 }
  0x55   : > { %s1628_s27 = scalar_lea.sflag [#allocation8], %s208_s19  ;;  %p1317_p7 = scmp.ne.s32.totalorder %s1589_s4, %s1316_s30 }
  0x56   : > { %s1321_s28 = scalar_lea.hbm %s1793_s1, 4096  ;;  %p1322_p8 = scmp.lt.u32.totalorder %s1589_s4, %s1793_s1 }
  0x57   : > { %p1319_p4 = pnand %p1317_p7, %p1288_p3  ;;  %p1323_p12 = scmp.lt.u32.totalorder %s1321_s28, %s1316_s30 }
  0x58   : > { %p1325_p0 = scmp.lt.u32.totalorder %s1316_s30, %s1589_s4 }
  0x59   : > { %p1320_p6 = pneg %p1319_p4  ;;  %p1324_p11 = por %p1323_p12, %p1322_p8 }
  0x5b   : > { %p1326_p5 = por %p1325_p0, %p1324_p11 }
  0x5d   : > { %p1327_p9 = pnand %p1326_p5, %p1320_p6 }
  0x5f   : > { %1330 = shalt.err (!%p1327_p9)
}
  0x60   : > { %s1331_s9 = scalar_lea.vmem %s1625_s8, 2048  ;;  %s1442_s6 = smov [#allocation7]  }
  0x61   : > { %p1332_p1 = scmp.ne.s32.totalorder %s1625_s8, %s1331_s9  ;;  %s1336_s10 = sshll.u32 %s1442_s6, 4  ;;  %s1337_s10 = int_to_ptr.vmem [resolvable:$false] %s1336_s10 }
  0x62   : > { %s1338_s0 = scalar_lea.vmem %s1337_s10, 4096  ;;  %p1339_p4 = scmp.lt.s32.totalorder %s1625_s8, %s1337_s10 }
  0x63   : > { %p1334_p2 = pnand %p1332_p1, %p1288_p3  ;;  %p1340_p8 = scmp.lt.s32.totalorder %s1338_s0, %s1331_s9 }
  0x65   : > { %p1335_p7 = pneg %p1334_p2  ;;  %p1341_p12 = por %p1340_p8, %p1339_p4 }
  0x67   : > { %p1342_p11 = pnand %p1341_p12, %p1335_p7 }
  0x69   : > { %1345 = shalt.err (!%p1342_p11)
}
  0x6a   : > { %1196 = dma.hbm_to_vmem [thread:$0]  (!%p1582_p13), %s1589_s4, 2048, %s1625_s8, %s1628_s27, %s1816_s23, %s1816_s23, %s1815_s7  }
  0x6b   : > { %p1817_p3 = scmp.ne.s32.totalorder %s1807_s22, 0 }
  0x6c   : > { %s1660_s19 = sand.u32 (!%p1817_p3), 1, %s1420_s13   ;;  %p1818_p6 = scmp.ne.s32.totalorder (!%p1817_p3), %s1805_s20, 0 }
  0x6d   : > { %234 = sbr.rel (%p1817_p3) target bundleno = 661 (0x295), region = 32  ;;  %s1663_s30 = sshll.u32 (!%p1817_p3), %s1660_s19, 7 }
  0x6e   : > { %s237_s11 = scalar_lea.sflag (!%p1817_p3), [#allocation5], %s1660_s19  ;;  %s1667_s24 = scalar_lea.vmem (!%p1817_p3), [#allocation4], %s1663_s30 }
  0x74   : > { %1399 = dma.done.wait (%p1818_p6), %s237_s11, 2048  }
  0x75   : > { %1401 = vsyncadd (%p1818_p6), %s237_s11, 4294965248  ;;  %s245_s22 = sand.u32 1, %s1497_s18   ;;  %s1675_s4 = scalar_lea.vmem [#allocation7], %s1663_s30 }
  0x76   : > { %s246_s8 = scalar_lea.sflag [#allocation8], %s245_s22 }
  0x77   : > { %1403 = dma.done.wait (%p1818_p6), %s246_s8, 2048  }
  0x78   : > { %1405 = vsyncadd (%p1818_p6), %s246_s8, 4294965248  ;;  %p1819_p13 = scmp.eq.s32.totalorder %s1497_s18, 0 }
  0x7a   : > { %1407 = dma.done.wait (%p1819_p13), [#allocation8], 2048   ;;  %p1820_p0 = pmov %p1819_p13 }
  0x7b   : > { %v307_v0 = vld [vmem:[#allocation9] sm:$0xff]  ;;  %v308_v1 = vld [vmem:[#allocation9 + $0x8] sm:$0xff]  ;;  %v309_v2 = vld [vmem:[#allocation9 + $0x10] sm:$0xff]  ;;  %s1718_s18 = scalar_lea.vmem [#allocation10], %s1663_s30  ;;  %s935_s20 = sshll.u32 %s1428_s15, 11 }
  0x7c   : > { %1409 = vsyncadd (%p1820_p0), [#allocation8], 4294965248  ;;  %v1112_v3 = vpack.c.bf16 %v308_v1, %v307_v0  ;;  %v310_v4 = vld [vmem:[#allocation9 + $0x18] sm:$0xff]  ;;  %v311_v6 = vld [vmem:[#allocation9 + $0x20] sm:$0xff]  ;;  %s782_s7 = sshll.u32 %s1718_s18, 4  ;;  %s1739_s2 = scalar_lea.hbm %s1795_s3, %s935_s20  ;;  %s1741_s7 = int_to_ptr.vmem [resolvable:$true] %s782_s7 }
  0x7d   : > { %v1116_v5 = vpack.c.bf16 %v310_v4, %v309_v2  ;;  %v312_v7 = vld [vmem:[#allocation9 + $0x28] sm:$0xff]  ;;  %v291_v9 = vld [vmem:[%s1667_s24] sm:$0xff]  ;;  %v313_v10 = vld [vmem:[#allocation9 + $0x30] sm:$0xff]  ;;  %s767_s28 = scalar_lea.sflag [#allocation6], %s1660_s19  ;;  %s1346_s15 = scalar_lea.vmem %s1741_s7, 2048 }
  0x7e   : > { %1113 = vmatprep.subr.bf16.mxu0 %v1112_v3  ;;  %v1120_v8 = vpack.c.bf16 %v312_v7, %v311_v6  ;;  %v314_v11 = vld [vmem:[#allocation9 + $0x38] sm:$0xff]  ;;  %1032 = vmatprep.mubr.f32.mxu0 %v291_v9  ;;  %v315_v13 = vld [vmem:[#allocation9 + $0x40] sm:$0xff]  ;;  %v316_v14 = vld [vmem:[#allocation9 + $0x48] sm:$0xff]  ;;  %p1347_p5 = scmp.ne.s32.totalorder %s1741_s7, %s1346_s15  ;;  %s1443_s5 = smov [#allocation10]  }
  0x7f   : > { %1115 = vmatpush3.bf16.msra.mxu0 %v1112_v3  ;;  %v1124_v12 = vpack.c.bf16 %v314_v11, %v313_v10  ;;  %v1128_v15 = vpack.c.bf16 %v316_v14, %v315_v13  ;;  %v317_v16 = vld [vmem:[#allocation9 + $0x50] sm:$0xff]  ;;  %v318_v17 = vld [vmem:[#allocation9 + $0x58] sm:$0xff]  ;;  %v319_v19 = vld [vmem:[#allocation9 + $0x60] sm:$0xff]  ;;  %s1350_s9 = sshll.u32 %s1443_s5, 4  ;;  %s1351_s9 = int_to_ptr.vmem [resolvable:$false] %s1350_s9 }
  0x80   : > { %1117 = vmatprep.subr.bf16.mxu0 %v1116_v5  ;;  %v1132_v18 = vpack.c.bf16 %v318_v17, %v317_v16  ;;  %v320_v20 = vld [vmem:[#allocation9 + $0x68] sm:$0xff]  ;;  %v321_v22 = vld [vmem:[#allocation9 + $0x70] sm:$0xff]  ;;  %v322_v23 = vld [vmem:[#allocation9 + $0x78] sm:$0xff]  ;;  %p1348_p9 = pnand %p1347_p5, %p1561_p10  ;;  %s1352_s6 = scalar_lea.vmem %s1351_s9, 4096 }
  0x81   : > { %v1136_v21 = vpack.c.bf16 %v320_v20, %v319_v19  ;;  %v1140_v24 = vpack.c.bf16 %v322_v23, %v321_v22  ;;  %v292_v25 = vld [vmem:[%s1667_s24 + $0x8] sm:$0xff]  ;;  %v293_v26 = vld [vmem:[%s1667_s24 + $0x10] sm:$0xff]  ;;  %v294_v27 = vld [vmem:[%s1667_s24 + $0x18] sm:$0xff]  ;;  %p1353_p2 = scmp.lt.s32.totalorder %s1741_s7, %s1351_s9  ;;  %p1354_p7 = scmp.lt.s32.totalorder %s1352_s6, %s1346_s15 }
  0x82   : > { %v295_v28 = vld [vmem:[%s1667_s24 + $0x20] sm:$0xff]  ;;  %v296_v29 = vld [vmem:[%s1667_s24 + $0x28] sm:$0xff]  ;;  %v297_v30 = vld [vmem:[%s1667_s24 + $0x30] sm:$0xff]  ;;  %p1349_p1 = pneg %p1348_p9 }
  0x83   : > { %1119 = vmatpush3.bf16.msra.mxu0 %v1116_v5  ;;  %v298_v31 = vld [vmem:[%s1667_s24 + $0x38] sm:$0xff]  ;;  %v299_v32 = vld [vmem:[%s1667_s24 + $0x40] sm:$0xff]  ;;  %v300_v33 = vld [vmem:[%s1667_s24 + $0x48] sm:$0xff]  ;;  %p1355_p4 = por %p1354_p7, %p1353_p2 }
  0x84   : > { %1121 = vmatprep.subr.bf16.mxu0 %v1120_v8  ;;  %v301_v34 = vld [vmem:[%s1667_s24 + $0x50] sm:$0xff]  ;;  %v302_v35 = vld [vmem:[%s1667_s24 + $0x58] sm:$0xff]  ;;  %v303_v36 = vld [vmem:[%s1667_s24 + $0x60] sm:$0xff] }
  0x85   : > { %v304_v37 = vld [vmem:[%s1667_s24 + $0x68] sm:$0xff]  ;;  %v305_v38 = vld [vmem:[%s1667_s24 + $0x70] sm:$0xff]  ;;  %v306_v39 = vld [vmem:[%s1667_s24 + $0x78] sm:$0xff]  ;;  %p1356_p8 = pnand %p1355_p4, %p1349_p1 }
  0x86   : > { %v538_v40 = vld [vmem:[%s1675_s4] sm:$0xff]  ;;  %v539_v1 = vld [vmem:[%s1675_s4 + $0x8] sm:$0xff]  ;;  %v540_v2 = vld [vmem:[%s1675_s4 + $0x10] sm:$0xff] }
  0x87   : > { %1123 = vmatpush3.bf16.msra.mxu0 %v1120_v8  ;;  %1088 = vmatprep.mubr.f32.mxu1 %v538_v40  ;;  %v541_v3 = vld [vmem:[%s1675_s4 + $0x18] sm:$0xff]  ;;  %v542_v4 = vld [vmem:[%s1675_s4 + $0x20] sm:$0xff]  ;;  %v543_v5 = vld [vmem:[%s1675_s4 + $0x28] sm:$0xff] }
  0x88   : > { %1125 = vmatprep.subr.bf16.mxu0 %v1124_v12  ;;  %v544_v6 = vld [vmem:[%s1675_s4 + $0x30] sm:$0xff]  ;;  %v545_v7 = vld [vmem:[%s1675_s4 + $0x38] sm:$0xff]  ;;  %v546_v8 = vld [vmem:[%s1675_s4 + $0x40] sm:$0xff] }
  0x89   : > { %v547_v9 = vld [vmem:[%s1675_s4 + $0x48] sm:$0xff]  ;;  %v548_v10 = vld [vmem:[%s1675_s4 + $0x50] sm:$0xff]  ;;  %v549_v11 = vld [vmem:[%s1675_s4 + $0x58] sm:$0xff] }
  0x8a   : > { %v551_v13 = vld [vmem:[%s1675_s4 + $0x68] sm:$0xff]  ;;  %v552_v14 = vld [vmem:[%s1675_s4 + $0x70] sm:$0xff] }
  0x8b   : > { %1127 = vmatpush3.bf16.msra.mxu0 %v1124_v12  ;;  %v550_v12 = vld [vmem:[%s1675_s4 + $0x60] sm:$0xff] }
  0x8c   : > { %1129 = vmatprep.subr.bf16.mxu0 %v1128_v15 }
  0x8f   : > { %1131 = vmatpush3.bf16.msra.mxu0 %v1128_v15  ;;  %v553_v15 = vld [vmem:[%s1675_s4 + $0x78] sm:$0xff] }
  0x90   : > { %1133 = vmatprep.subr.bf16.mxu0 %v1132_v18 }
  0x93   : > { %1135 = vmatpush3.bf16.msra.mxu0 %v1132_v18 }
  0x94   : > { %1137 = vmatprep.subr.bf16.mxu0 %v1136_v21 }
  0x97   : > { %1139 = vmatpush3.bf16.msra.mxu0 %v1136_v21 }
  0x98   : > { %1141 = vmatprep.subr.bf16.mxu0 %v1140_v24 }
  0x9b   : > { %1143 = vmatpush3.bf16.msra.mxu0 %v1140_v24 }
  0x9e   : > { %1033 = vmatmul.mubr.f32.vlgmr.msra.gmra.mrb[0].mxu0 %v292_v25 }
  0x9f   : > { %1035 = vmatprep.mubr.f32.mxu0 %v293_v26 }
  0xa2   : > { %1036 = vmatmul.mubr.f32.gmra.mrb[2].mxu0 %v294_v27 }
  0xa3   : > { %1038 = vmatprep.mubr.f32.mxu0 %v295_v28 }
  0xa6   : > { %1039 = vmatmul.mubr.f32.gmra.mrb[4].mxu0 %v296_v29 }
  0xa7   : > { %1041 = vmatprep.mubr.f32.mxu0 %v297_v30 }
  0xaa   : > { %1042 = vmatmul.mubr.f32.gmra.mrb[6].mxu0 %v298_v31 }
  0xab   : > { %1044 = vmatprep.mubr.f32.mxu0 %v299_v32 }
  0xae   : > { %1045 = vmatmul.mubr.f32.gmra.mrb[8].mxu0 %v300_v33 }
  0xaf   : > { %1047 = vmatprep.mubr.f32.mxu0 %v301_v34 }
  0xb2   : > { %1048 = vmatmul.mubr.f32.gmra.mrb[10].mxu0 %v302_v35 }
  0xb3   : > { %1050 = vmatprep.mubr.f32.mxu0 %v303_v36 }
  0xb6   : > { %1051 = vmatmul.mubr.f32.gmra.mrb[12].mxu0 %v304_v37 }
  0xb7   : > { %1053 = vmatprep.mubr.f32.mxu0 %v305_v38 }
  0xba   : > { %1054 = vmatmul.mubr.f32.gmra.mrb[14].mxu0 %v306_v39 }
 0x171   : > { %v1034_v41 = vpop.f32.mrb[0].mxu0 }
 0x172   : > { %v389_v42 = vpop.f32.mrb[1].mxu0 }
 0x173   : > { %v1144_v43 = vpack.c.bf16 %v1034_v41, %v389_v42 }
 0x175   : > { %v1037_v44 = vpop.f32.mrb[2].mxu0  ;;  %1145 = vmatprep.subr.bf16.mxu1 %v1144_v43 }
 0x176   : > { %v399_v45 = vpop.f32.mrb[3].mxu0  ;;  %1147 = vmatpush3.bf16.msra.mxu1 %v1144_v43 }
 0x177   : > { %v1148_v46 = vpack.c.bf16 %v1037_v44, %v399_v45 }
 0x179   : > { %v1040_v47 = vpop.f32.mrb[4].mxu0  ;;  %1149 = vmatprep.subr.bf16.mxu1 %v1148_v46 }
 0x17a   : > { %v409_v48 = vpop.f32.mrb[5].mxu0  ;;  %1151 = vmatpush3.bf16.msra.mxu1 %v1148_v46 }
 0x17b   : > { %v1152_v49 = vpack.c.bf16 %v1040_v47, %v409_v48 }
 0x17d   : > { %v1043_v50 = vpop.f32.mrb[6].mxu0  ;;  %1153 = vmatprep.subr.bf16.mxu1 %v1152_v49 }
 0x17e   : > { %v419_v51 = vpop.f32.mrb[7].mxu0  ;;  %1155 = vmatpush3.bf16.msra.mxu1 %v1152_v49 }
 0x17f   : > { %v1156_v52 = vpack.c.bf16 %v1043_v50, %v419_v51 }
 0x181   : > { %v1046_v53 = vpop.f32.mrb[8].mxu0  ;;  %1157 = vmatprep.subr.bf16.mxu1 %v1156_v52 }
 0x182   : > { %v429_v54 = vpop.f32.mrb[9].mxu0  ;;  %1159 = vmatpush3.bf16.msra.mxu1 %v1156_v52 }
 0x183   : > { %v1160_v55 = vpack.c.bf16 %v1046_v53, %v429_v54 }
 0x185   : > { %v1049_v56 = vpop.f32.mrb[10].mxu0  ;;  %1161 = vmatprep.subr.bf16.mxu1 %v1160_v55 }
 0x186   : > { %v439_v57 = vpop.f32.mrb[11].mxu0  ;;  %1163 = vmatpush3.bf16.msra.mxu1 %v1160_v55 }
 0x187   : > { %v1164_v58 = vpack.c.bf16 %v1049_v56, %v439_v57 }
 0x189   : > { %v1052_v59 = vpop.f32.mrb[12].mxu0  ;;  %1165 = vmatprep.subr.bf16.mxu1 %v1164_v58 }
 0x18a   : > { %v449_v60 = vpop.f32.mrb[13].mxu0  ;;  %1167 = vmatpush3.bf16.msra.mxu1 %v1164_v58 }
 0x18b   : > { %v1168_v61 = vpack.c.bf16 %v1052_v59, %v449_v60 }
 0x18d   : > { %v1055_v62 = vpop.f32.mrb[14].mxu0  ;;  %1169 = vmatprep.subr.bf16.mxu1 %v1168_v61 }
 0x18e   : > { %v459_v63 = vpop.f32.mrb[15].mxu0  ;;  %1171 = vmatpush3.bf16.msra.mxu1 %v1168_v61 }
 0x18f   : > { %v1172_v0 = vpack.c.bf16 %v1055_v62, %v459_v63 }
 0x191   : > { %1173 = vmatprep.subr.bf16.mxu1 %v1172_v0 }
 0x192   : > { %1175 = vmatpush3.bf16.msra.mxu1 %v1172_v0 }
 0x195   : > { %1089 = vmatmul.mubr.f32.vlgmr.msra.gmra.mrb[0].mxu1 %v539_v1 }
 0x196   : > { %1091 = vmatprep.mubr.f32.mxu1 %v540_v2 }
 0x199   : > { %1092 = vmatmul.mubr.f32.gmra.mrb[2].mxu1 %v541_v3 }
 0x19a   : > { %1094 = vmatprep.mubr.f32.mxu1 %v542_v4 }
 0x19d   : > { %1095 = vmatmul.mubr.f32.gmra.mrb[4].mxu1 %v543_v5 }
 0x19e   : > { %1097 = vmatprep.mubr.f32.mxu1 %v544_v6 }
 0x1a1   : > { %1098 = vmatmul.mubr.f32.gmra.mrb[6].mxu1 %v545_v7 }
 0x1a2   : > { %1100 = vmatprep.mubr.f32.mxu1 %v546_v8 }
 0x1a5   : > { %1101 = vmatmul.mubr.f32.gmra.mrb[8].mxu1 %v547_v9 }
 0x1a6   : > { %1103 = vmatprep.mubr.f32.mxu1 %v548_v10 }
 0x1a9   : > { %1104 = vmatmul.mubr.f32.gmra.mrb[10].mxu1 %v549_v11 }
 0x1aa   : > { %1106 = vmatprep.mubr.f32.mxu1 %v550_v12 }
 0x1ad   : > { %1107 = vmatmul.mubr.f32.gmra.mrb[12].mxu1 %v551_v13 }
 0x1ae   : > { %1109 = vmatprep.mubr.f32.mxu1 %v552_v14 }
 0x1b1   : > { %1110 = vmatmul.mubr.f32.gmra.mrb[14].mxu1 %v553_v15 }
 0x268   : > { %v1090_v16 = vpop.f32.mrb[0].mxu1 }
 0x269   : > { %751 = vst [vmem:[%s1718_s18 + $0x8] sm:$0xff] %v1090_v16  ;;  %v620_v17 = vpop.f32.mrb[1].mxu1 }
 0x26a   : > { %750 = vst [vmem:[%s1718_s18] sm:$0xff] %v620_v17 }
 0x26c   : > { %v1093_v18 = vpop.f32.mrb[2].mxu1 }
 0x26d   : > { %753 = vst [vmem:[%s1718_s18 + $0x18] sm:$0xff] %v1093_v18  ;;  %v630_v19 = vpop.f32.mrb[3].mxu1 }
 0x26e   : > { %752 = vst [vmem:[%s1718_s18 + $0x10] sm:$0xff] %v630_v19 }
 0x270   : > { %v1096_v20 = vpop.f32.mrb[4].mxu1 }
 0x271   : > { %755 = vst [vmem:[%s1718_s18 + $0x28] sm:$0xff] %v1096_v20  ;;  %v640_v21 = vpop.f32.mrb[5].mxu1 }
 0x272   : > { %754 = vst [vmem:[%s1718_s18 + $0x20] sm:$0xff] %v640_v21 }
 0x274   : > { %v1099_v22 = vpop.f32.mrb[6].mxu1 }
 0x275   : > { %757 = vst [vmem:[%s1718_s18 + $0x38] sm:$0xff] %v1099_v22  ;;  %v650_v23 = vpop.f32.mrb[7].mxu1 }
 0x276   : > { %756 = vst [vmem:[%s1718_s18 + $0x30] sm:$0xff] %v650_v23 }
 0x278   : > { %v1102_v24 = vpop.f32.mrb[8].mxu1 }
 0x279   : > { %759 = vst [vmem:[%s1718_s18 + $0x48] sm:$0xff] %v1102_v24  ;;  %v660_v25 = vpop.f32.mrb[9].mxu1 }
 0x27a   : > { %758 = vst [vmem:[%s1718_s18 + $0x40] sm:$0xff] %v660_v25 }
 0x27c   : > { %v1105_v26 = vpop.f32.mrb[10].mxu1 }
 0x27d   : > { %761 = vst [vmem:[%s1718_s18 + $0x58] sm:$0xff] %v1105_v26  ;;  %v670_v27 = vpop.f32.mrb[11].mxu1 }
 0x27e   : > { %760 = vst [vmem:[%s1718_s18 + $0x50] sm:$0xff] %v670_v27 }
 0x280   : > { %v1108_v28 = vpop.f32.mrb[12].mxu1 }
 0x281   : > { %763 = vst [vmem:[%s1718_s18 + $0x68] sm:$0xff] %v1108_v28  ;;  %v680_v29 = vpop.f32.mrb[13].mxu1 }
 0x282   : > { %762 = vst [vmem:[%s1718_s18 + $0x60] sm:$0xff] %v680_v29 }
 0x284   : > { %v1111_v30 = vpop.f32.mrb[14].mxu1 }
 0x285   : > { %765 = vst [vmem:[%s1718_s18 + $0x78] sm:$0xff] %v1111_v30  ;;  %v690_v31 = vpop.f32.mrb[15].mxu1 }
 0x286   : > { %764 = vst [vmem:[%s1718_s18 + $0x70] sm:$0xff] %v690_v31 }
 0x287   : > { %1359 = shalt.err (!%p1356_p8)
}
 0x288   : > { %s1360_s10 = scalar_lea.hbm %s1739_s2, 2048  ;;  %s1364_s11 = scalar_lea.hbm %s1795_s3, 4096 }
 0x289   : > { %p1361_p12 = scmp.ne.s32.totalorder %s1739_s2, %s1360_s10  ;;  %p1365_p6 = scmp.lt.u32.totalorder %s1739_s2, %s1795_s3 }
 0x28a   : > { %p1366_p13 = scmp.lt.u32.totalorder %s1364_s11, %s1360_s10  ;;  %p1368_p5 = scmp.lt.u32.totalorder %s1360_s10, %s1739_s2 }
 0x28b   : > { %p1362_p11 = pnand %p1361_p12, %p1561_p10 }
 0x28c   : > { %p1367_p0 = por %p1366_p13, %p1365_p6 }
 0x28d   : > { %p1363_p3 = pneg %p1362_p11 }
 0x28e   : > { %p1369_p9 = por %p1368_p5, %p1367_p0 }
 0x290   : > { %p1370_p1 = pnand %p1369_p9, %p1363_p3 }
 0x292   : > { %1373 = shalt.err (!%p1370_p1)
}
 0x293   : > { %s1444_s8 = smov 128   ;;  %s1445_s4 = smov 8  }
 0x294   : > { %1184 = dma.vmem_to_hbm [thread:$0]  (%p1561_p10), %s1741_s7, 2048, %s1739_s2, %s767_s28, %s1444_s8, %s1444_s8, %s1445_s4  }
 0x295 PF: > { %s797_s18 = sand.u32 1, %s1416_s12   ;;  %p1821_p2 = scmp.ne.s32.totalorder %s1806_s21, 0 }
 0x296   : > { %p1822_p7 = scmp.ge.s32.totalorder %s1436_s17, 2  ;;  %s798_s20 = scalar_lea.sflag [#allocation6], %s797_s18 }
 0x298   : > { %p1198_p4 = pnand %p1822_p7, %p1821_p2 }
 0x29a   : > { %1411 = dma.done.wait (!%p1198_p4), %s798_s20, 2048  }
 0x29b   : > { %1413 = vsyncadd (!%p1198_p4), %s798_s20, 4294965248  ;;  %s22_s17 = sadd.s32 1, %s1436_s17   ;;  %s1823_s12 = smov %s1420_s13 }
 0x29c   : > { %p19_p8 = scmp.ge.s32.totalorder %s22_s17, 4   ;;  %s1824_s13 = smov %s1424_s14 }
 0x29d   : > { %s1825_s14 = smov %s1570_s29  ;;  %s1826_s15 = smov %s1432_s16 }
 0x29e   : > { %s1827_s16 = smov %s1829_s26  ;;  %21 = sbr.rel (!%p19_p8) target bundleno = 11 (0xb), region = 108 }
 0x2a5   :  { %803 = vsyncpa [#allocation5], 1 }
 0x2a6   :  { %805 = vsyncpa [#allocation5 + $0x1], 1 }
 0x2a7   :  { %806 = vsyncpa [#allocation8], 1 }
 0x2a8   :  { %808 = vsyncpa [#allocation8 + $0x1], 1 }
 0x2a9   :  { %809 = vsyncpa [#allocation6], 1 }
 0x2aa   :  { %811 = vsyncpa [#allocation6 + $0x1], 1 }

</bundles_post_ra>
